<compile_context>
chip_gen: v7x
topology: tpu7x:2x2x1
jax: 0.10.0
libtpu: 0.0.40
codegen_flags: <defaults>
</compile_context>

<pallas_src>
import functools

import jax
import jax.numpy as jnp
from jax import lax
from jax.experimental import pallas as pl
from jax.experimental.pallas import tpu as pltpu

BN_EPS = 1e-5                # nn.BatchNorm1d default eps
LEAKY_SLOPE = 0.1            # nn.LeakyReLU(0.1)


# --------------------------------------------------------------------------- #
# Kernels
# --------------------------------------------------------------------------- #
def pool_bn_kernel(x_ref, gamma_ref, beta_ref, f_ref, feat_ref, acc_ref,
                   *, hw, hw_tile):
    """Streaming global max pool over the spatial (last/lane) axis, then
    training-mode BatchNorm1d + LeakyReLU(0.1) on the pooled (N, c_tile) tile."""
    k = pl.program_id(1)                         # spatial (reduction) axis

    @pl.when(k == 0)
    def _init():
        acc_ref[...] = jnp.full_like(acc_ref, -jnp.inf)

    xb = x_ref[...]                              # (N, c_tile, hw_tile)
    if hw % hw_tile != 0:
        # cdiv grid: mask the out-of-bounds tail lanes with -inf (neutral for max)
        # rather than padding the whole feature map in the wrapper.
        lane = lax.broadcasted_iota(jnp.int32, (1, 1, hw_tile), 2)
        valid = (k * hw_tile + lane) < hw
        xb = jnp.where(valid, xb, -jnp.inf)

    # (N, c_tile, hw_tile) -> (N, c_tile): lane-direction reduce, running max.
    tile_max = jnp.max(xb, axis=-1).astype(jnp.float32)
    acc_ref[...] = jnp.maximum(acc_ref[...], tile_max)

    @pl.when(k == pl.num_programs(1) - 1)
    def _finalize():
        f = acc_ref[...]                         # pooled features for this channel tile
        f_ref[...] = f.astype(f_ref.dtype)

        # BatchNorm1d, training mode: biased batch statistics over the batch axis
        # (per-channel, so tiling channels is exact).
        mean = jnp.mean(f, axis=0, keepdims=True)
        centered = f - mean
        var = jnp.mean(centered * centered, axis=0, keepdims=True)
        bn = centered * lax.rsqrt(var + BN_EPS) * gamma_ref[...] + beta_ref[...]

        # LeakyReLU(0.1)
        feat = jnp.where(bn >= 0, bn, LEAKY_SLOPE * bn)
        feat_ref[...] = feat.astype(feat_ref.dtype)


def classifier_kernel(feat_ref, w_ref, b_ref, y_ref):
    """y[:, tile] = feat @ W[tile, :].T + b[tile].

    W stays in its native (num_classes, C) layout; contract over the feature axis.
    f32 MXU matmul (matches the PyTorch nn.Linear numerics)."""
    y = lax.dot_general(feat_ref[...], w_ref[...],
                        dimension_numbers=(((1,), (1,)), ((), ())),
                        preferred_element_type=jnp.float32)
    y_ref[...] = (y + b_ref[...]).astype(y_ref.dtype)


# --------------------------------------------------------------------------- #
# Tiling / budgeting policy
# --------------------------------------------------------------------------- #
def _vmem_budget():
    """(vmem_limit_bytes, x_double_buffer_budget_bytes), derived from the chip."""
    try:
        cap = int(pltpu.get_tpu_info().vmem_capacity_bytes)
    except Exception:
        cap = 64 * 1024 * 1024          # conservative (v7x per-TC) fallback
    vmem_limit = (cap * 3) // 4         # leave headroom for compiler scratch
    x_budget = min(vmem_limit // 3, 20 * 1024 * 1024)
    return vmem_limit, x_budget


def _largest_c_divisor(c, cap, prefer_even_count=True):
    """Largest multiple-of-128 divisor of `c` that is <= cap; when possible pick one
    whose tile count is even (balances a 'parallel' axis across v7x's two TCs)."""
    cap = max(128, (min(cap, c) // 128) * 128)
    best = None
    t = cap
    while t >= 128:
        if c % t == 0:
            if best is None:
                best = t
            if not prefer_even_count or (c // t) % 2 == 0:
                return t
        t -= 128
    return best


def _pick_x_tiles(n, c, hw, itemsize, x_budget):
    """Pick (c_tile, hw_tile) for the (N, C, HW) pool input so that
       * c_tile is a multiple-of-128 divisor of C (lane dim of the pooled outputs),
         preferably giving an even tile count >= 2,
       * hw_tile is a multiple of 128 (tail handled by in-kernel mask),
       * 2 * N * c_tile * hw_tile * itemsize <= x_budget,
       * the total grid has >= 4 steps so double-buffering overlaps DMA/compute."""
    # spatial (lane) tile
    if hw <= 128:
        hw_tile = hw                                    # full extent (allowed)
    else:
        hw_tile = min(512, max(128, (hw // 128) * 128))  # multiple of 128, <= hw

    # channel tile
    if c % 128 != 0 or c < 256:
        c_tile = c
    else:
        max_c = x_budget // (2 * n * hw_tile * itemsize)
        max_c = min(max_c, c // 2)                      # >= 2 channel tiles (v7x)
        c_tile = _largest_c_divisor(c, max_c) or c

    # If the 128-channel floor pushed the double-buffered block over budget,
    # shrink the lane tile (not the channel tile) toward 128.
    while 2 * n * c_tile * hw_tile * itemsize > x_budget and hw_tile > 128:
        hw_tile = max(128, ((hw_tile // 2) // 128) * 128)
    # TODO(synk): for extreme N the block may still exceed the budget at the
    # (128, 128) floor; batch tiling would be needed in that case.

    # Guarantee >= 4 grid steps (prefer splitting channels: keeps lane tiles big).
    while (c // c_tile) * (-(-hw // hw_tile)) < 4:
        smaller_c = (_largest_c_divisor(c, c_tile - 128)
                     if (c_tile > 128 and c % 128 == 0) else None)
        if smaller_c:
            c_tile = smaller_c
            continue
        new_hw = max(128, ((hw_tile // 2) // 128) * 128)
        if new_hw < hw_tile:
            hw_tile = new_hw
            continue
        break
    return c_tile, hw_tile


def _pick_class_tile(num_classes):
    if num_classes % 128 != 0:
        # Single lane-dense block equal to the full extent: no wrapper-side pad.
        return num_classes
    # Prefer an even tile count so the 'parallel' class axis balances across v7x TCs.
    for cand in (512, 256, 128):
        if num_classes % cand == 0 and (num_classes // cand) % 2 == 0:
            return cand
    for cand in (512, 256, 128):
        if num_classes % cand == 0:
            return cand
    return num_classes


# --------------------------------------------------------------------------- #
# Forward
# --------------------------------------------------------------------------- #
def generalized_fpn_head(x_nchw, bn_gamma, bn_beta, w_cls, b_cls):
    """Forward of the re-id head.  Returns (y, feat, f, classifier_weight, noise,
    y_cam) matching the PyTorch 'softmax+metric' training path."""
    N, C, H, W = x_nchw.shape
    HW = H * W
    num_classes = w_cls.shape[0]

    vmem_limit, x_budget = _vmem_budget()

    # Free, contiguous reshape (no transpose): pool over the last axis in-kernel.
    x = x_nchw.reshape(N, C, HW)
    gamma2 = bn_gamma.reshape(1, C).astype(jnp.float32)
    beta2 = bn_beta.reshape(1, C).astype(jnp.float32)

    c_tile, hw_tile = _pick_x_tiles(N, C, HW, x.dtype.itemsize, x_budget)
    n_c_tiles = C // c_tile
    n_hw_tiles = pl.cdiv(HW, hw_tile)

    pool_cost = pl.CostEstimate(
        flops=N * C * HW,
        transcendentals=0,
        bytes_accessed=N * C * HW * x.dtype.itemsize + 2 * N * C * 4 + 2 * C * 4,
    )

    f, feat = pl.pallas_call(
        functools.partial(pool_bn_kernel, hw=HW, hw_tile=hw_tile),
        out_shape=(
            jax.ShapeDtypeStruct((N, C), x.dtype),       # f    (pooled features)
            jax.ShapeDtypeStruct((N, C), jnp.float32),   # feat (BN + LeakyReLU)
        ),
        grid=(n_c_tiles, n_hw_tiles),
        in_specs=[
            pl.BlockSpec((N, c_tile, hw_tile), lambda c, k: (0, c, k)),
            pl.BlockSpec((1, c_tile), lambda c, k: (0, c)),
            pl.BlockSpec((1, c_tile), lambda c, k: (0, c)),
        ],
        out_specs=(
            pl.BlockSpec((N, c_tile), lambda c, k: (0, c)),
            pl.BlockSpec((N, c_tile), lambda c, k: (0, c)),
        ),
        scratch_shapes=[pltpu.VMEM((N, c_tile), jnp.float32)],
        compiler_params=pltpu.CompilerParams(
            dimension_semantics=("parallel", "arbitrary"),
            vmem_limit_bytes=vmem_limit),
        cost_estimate=pool_cost,
    )(x, gamma2, beta2)

    # ---- classifier: Linear(C, num_classes) with bias, tiled over classes ----
    tn = _pick_class_tile(num_classes)
    w_f32 = w_cls.astype(jnp.float32)            # native (num_classes, C) layout
    b2 = b_cls.reshape(1, num_classes).astype(jnp.float32)

    cls_cost = pl.CostEstimate(
        flops=2 * N * C * num_classes,
        transcendentals=0,
        bytes_accessed=(num_classes * C + N * C + N * num_classes + num_classes) * 4,
    )

    y = pl.pallas_call(
        classifier_kernel,
        out_shape=jax.ShapeDtypeStruct((N, num_classes), jnp.float32),
        grid=(num_classes // tn,),
        in_specs=[
            pl.BlockSpec((N, C), lambda j: (0, 0)),
            pl.BlockSpec((tn, C), lambda j: (j, 0)),
            pl.BlockSpec((1, tn), lambda j: (0, j)),
        ],
        out_specs=pl.BlockSpec((N, tn), lambda j: (0, j)),
        compiler_params=pltpu.CompilerParams(
            dimension_semantics=("parallel",),   # class tiles shard across TCs (v7x)
            vmem_limit_bytes=vmem_limit),
        cost_estimate=cls_cost,
    )(feat, w_f32, b2)

    noise = None
    y_cam = None   # cfg.REID.CAMIDCLASS assumed False (classifier_cam unused)
    # TODO(synk): PyTorch BatchNorm1d in training mode also updates
    # running_mean/running_var (momentum 0.1); this forward uses batch stats only
    # and does not emit updated running statistics.
    return (y, feat, f, w_cls, noise, y_cam)


if __name__ == "__main__":
    key = jax.random.PRNGKey(0)

    # Small stand-in shapes (module hard-codes feat_dim=2048; scaled down here).
    N, C, H, W = 4, 256, 16, 16
    num_classes = 128

    k1, k2, k3 = jax.random.split(key, 3)

    # TODO(synk): Conv_Body is an external config-driven ResNet+FPN backbone; the
    # kernel consumes its output feature map directly as input (NCHW layout).
    x = jax.random.normal(k1, (N, C, H, W), jnp.float32)

    # bottleneck_sub2 BatchNorm1d params, weights_init_kaiming: N(1.0, 0.02), bias=0
    bn_gamma = 1.0 + 0.02 * jax.random.normal(k2, (C,), jnp.float32)
    bn_beta = jnp.zeros((C,), jnp.float32)

    # classifier params, weights_init_classifier: N(0, 0.001), bias=0
    w_cls = 0.001 * jax.random.normal(k3, (num_classes, C), jnp.float32)
    b_cls = jnp.zeros((num_classes,), jnp.float32)

    y, feat, f, w_out, noise, y_cam = generalized_fpn_head(
        x, bn_gamma, bn_beta, w_cls, b_cls)
    jax.block_until_ready((y, feat, f, w_out))
    print("KERNEL_OK")
</pallas_src>

<mosaic_0001>
module attributes {stable_mosaic.version = 11 : i64} {
  func.func @pool_bn_kernel(%arg0: i32, %arg1: i32, %arg2: memref<4x128x128xf32, #tpu.memory_space<vmem>>, %arg3: memref<1x128xf32, #tpu.memory_space<vmem>>, %arg4: memref<1x128xf32, #tpu.memory_space<vmem>>, %arg5: memref<4x128xf32, #tpu.memory_space<vmem>>, %arg6: memref<4x128xf32, #tpu.memory_space<vmem>>, %arg7: memref<4x128xf32, #tpu.memory_space<vmem>>) attributes {dimension_semantics = [#tpu.dimension_semantics<parallel>, #tpu.dimension_semantics<arbitrary>], iteration_bounds = array<i64: 2, 2>, scalar_prefetch = 0 : i64, scratch_operands = 1 : i64, tpu.core_type = #tpu.core_type<tc>, window_params = [{transform_indices = @transform_0, window_bounds = array<i64: 4, 128, 128>}, {transform_indices = @transform_1, window_bounds = array<i64: 1, 128>}, {transform_indices = @transform_2, window_bounds = array<i64: 1, 128>}, {transform_indices = @transform_3, window_bounds = array<i64: 4, 128>}, {transform_indices = @transform_4, window_bounds = array<i64: 4, 128>}]} {
    %c0_i32 = arith.constant 0 : i32
    %0 = arith.cmpi eq, %arg1, %c0_i32 : i32
    %1 = arith.extui %0 : i1 to i32
    %c0_i32_0 = arith.constant 0 : i32
    %2 = arith.cmpi ne, %1, %c0_i32_0 : i32
    scf.if %2 {
      %cst_8 = arith.constant 0xFF800000 : f32
      %11 = vector.broadcast %cst_8 : f32 to vector<4x128xf32>
      %c0_9 = arith.constant 0 : index
      %c0_10 = arith.constant 0 : index
      %12 = vector.load %arg7[%c0_9, %c0_10] : memref<4x128xf32, #tpu.memory_space<vmem>>, vector<4x128xf32>
      tpu.vector_store %arg7[%c0_9, %c0_10], %11 {strides = array<i32>} : memref<4x128xf32, #tpu.memory_space<vmem>>, vector<4x128xf32>,
    } else {
    }
    %c0 = arith.constant 0 : index
    %c0_1 = arith.constant 0 : index
    %c0_2 = arith.constant 0 : index
    %3 = vector.load %arg2[%c0, %c0_1, %c0_2] : memref<4x128x128xf32, #tpu.memory_space<vmem>>, vector<4x128x128xf32>
    %cst = arith.constant dense<0xFF800000> : vector<4x128xf32>
    %4 = vector.multi_reduction <maximumf>, %3, %cst [2] : vector<4x128x128xf32> to vector<4x128xf32>
    %c0_3 = arith.constant 0 : index
    %c0_4 = arith.constant 0 : index
    %5 = vector.load %arg7[%c0_3, %c0_4] : memref<4x128xf32, #tpu.memory_space<vmem>>, vector<4x128xf32>
    %6 = arith.maximumf %5, %4 : vector<4x128xf32>
    %c0_5 = arith.constant 0 : index
    %c0_6 = arith.constant 0 : index
    %7 = vector.load %arg7[%c0_5, %c0_6] : memref<4x128xf32, #tpu.memory_space<vmem>>, vector<4x128xf32>
    tpu.vector_store %arg7[%c0_5, %c0_6], %6 {strides = array<i32>} : memref<4x128xf32, #tpu.memory_space<vmem>>, vector<4x128xf32>,
    %c1_i32 = arith.constant 1 : i32
    %8 = arith.cmpi eq, %arg1, %c1_i32 : i32
    %9 = arith.extui %8 : i1 to i32
    %c0_i32_7 = arith.constant 0 : i32
    %10 = arith.cmpi ne, %9, %c0_i32_7 : i32
    scf.if %10 {
      %c0_8 = arith.constant 0 : index
      %c0_9 = arith.constant 0 : index
      %11 = vector.load %arg7[%c0_8, %c0_9] : memref<4x128xf32, #tpu.memory_space<vmem>>, vector<4x128xf32>
      %c0_10 = arith.constant 0 : index
      %c0_11 = arith.constant 0 : index
      %12 = vector.load %arg5[%c0_10, %c0_11] : memref<4x128xf32, #tpu.memory_space<vmem>>, vector<4x128xf32>
      tpu.vector_store %arg5[%c0_10, %c0_11], %11 {strides = array<i32>} : memref<4x128xf32, #tpu.memory_space<vmem>>, vector<4x128xf32>,
      %cst_12 = arith.constant dense<0.000000e+00> : vector<128xf32>
      %13 = vector.multi_reduction <add>, %11, %cst_12 [0] : vector<4x128xf32> to vector<128xf32>
      %14 = vector.shape_cast %13 : vector<128xf32> to vector<1x128xf32>
      %cst_13 = arith.constant 4.000000e+00 : f32
      %15 = vector.broadcast %cst_13 : f32 to vector<1x128xf32>
      %16 = arith.divf %14, %15 : vector<1x128xf32>
      %17 = vector.broadcast %16 : vector<1x128xf32> to vector<4x128xf32>
      %18 = arith.subf %11, %17 : vector<4x128xf32>
      %19 = arith.mulf %18, %18 : vector<4x128xf32>
      %cst_14 = arith.constant dense<0.000000e+00> : vector<128xf32>
      %20 = vector.multi_reduction <add>, %19, %cst_14 [0] : vector<4x128xf32> to vector<128xf32>
      %21 = vector.shape_cast %20 : vector<128xf32> to vector<1x128xf32>
      %cst_15 = arith.constant 4.000000e+00 : f32
      %22 = vector.broadcast %cst_15 : f32 to vector<1x128xf32>
      %23 = arith.divf %21, %22 : vector<1x128xf32>
      %cst_16 = arith.constant 9.99999974E-6 : f32
      %24 = vector.broadcast %cst_16 : f32 to vector<1x128xf32>
      %25 = arith.addf %23, %24 : vector<1x128xf32>
      %26 = math.rsqrt %25 : vector<1x128xf32>
      %27 = vector.broadcast %26 : vector<1x128xf32> to vector<4x128xf32>
      %28 = arith.mulf %18, %27 : vector<4x128xf32>
      %c0_17 = arith.constant 0 : index
      %c0_18 = arith.constant 0 : index
      %29 = vector.load %arg3[%c0_17, %c0_18] : memref<1x128xf32, #tpu.memory_space<vmem>>, vector<1x128xf32>
      %30 = vector.broadcast %29 : vector<1x128xf32> to vector<4x128xf32>
      %31 = arith.mulf %28, %30 : vector<4x128xf32>
      %c0_19 = arith.constant 0 : index
      %c0_20 = arith.constant 0 : index
      %32 = vector.load %arg4[%c0_19, %c0_20] : memref<1x128xf32, #tpu.memory_space<vmem>>, vector<1x128xf32>
      %33 = vector.broadcast %32 : vector<1x128xf32> to vector<4x128xf32>
      %34 = arith.addf %31, %33 : vector<4x128xf32>
      %cst_21 = arith.constant 0.000000e+00 : f32
      %35 = vector.broadcast %cst_21 : f32 to vector<4x128xf32>
      %36 = arith.cmpf oge, %34, %35 : vector<4x128xf32>
      %cst_22 = arith.constant 1.000000e-01 : f32
      %37 = vector.broadcast %cst_22 : f32 to vector<4x128xf32>
      %38 = arith.mulf %37, %34 : vector<4x128xf32>
      %39 = arith.select %36, %34, %38 : vector<4x128xi1>, vector<4x128xf32>
      %c0_23 = arith.constant 0 : index
      %c0_24 = arith.constant 0 : index
      %40 = vector.load %arg6[%c0_23, %c0_24] : memref<4x128xf32, #tpu.memory_space<vmem>>, vector<4x128xf32>
      tpu.vector_store %arg6[%c0_23, %c0_24], %39 {strides = array<i32>} : memref<4x128xf32, #tpu.memory_space<vmem>>, vector<4x128xf32>,
    } else {
    }
    return
  }
  func.func @transform_0(%arg0: i32, %arg1: i32) -> (i32, i32, i32) {
    %c0_i32 = arith.constant 0 : i32
    %c0_i32_0 = arith.constant 0 : i32
    return %c0_i32, %arg0, %arg1 : i32, i32, i32
  }
  func.func @transform_1(%arg0: i32, %arg1: i32) -> (i32, i32) {
    %c0_i32 = arith.constant 0 : i32
    %c0_i32_0 = arith.constant 0 : i32
    return %c0_i32, %arg0 : i32, i32
  }
  func.func @transform_2(%arg0: i32, %arg1: i32) -> (i32, i32) {
    %c0_i32 = arith.constant 0 : i32
    %c0_i32_0 = arith.constant 0 : i32
    return %c0_i32, %arg0 : i32, i32
  }
  func.func @transform_3(%arg0: i32, %arg1: i32) -> (i32, i32) {
    %c0_i32 = arith.constant 0 : i32
    %c0_i32_0 = arith.constant 0 : i32
    return %c0_i32, %arg0 : i32, i32
  }
  func.func @transform_4(%arg0: i32, %arg1: i32) -> (i32, i32) {
    %c0_i32 = arith.constant 0 : i32
    %c0_i32_0 = arith.constant 0 : i32
    return %c0_i32, %arg0 : i32, i32
  }
}

</mosaic_0001>

<bundles_post_ra>
// kernel: tpu_custom_call.1
= control target key start
LH: loop header
LB: loop body
LE: loop exit
PB: predicated region body
PF: predicated region fallthrough
CT: control target
= control target key end

     0   :  { %10 = vsyncpa [#allocation4], 0  ;;  %s2013_s0 = inlined_call_operand.hbm [shape: f32[4,256,256], index: 0, kind: input, shape index: {}]   ;;  %s2014_s1 = inlined_call_operand.vmem [shape: f32[1,256], index: 1, kind: input, shape index: {}]   ;;  %s2015_s2 = inlined_call_operand.vmem [shape: f32[1,256], index: 2, kind: input, shape index: {}]   ;;  %s2016_s3 = inlined_call_operand.hbm [shape: f32[4,256], index: 3, kind: output, shape index: {0}]   ;;  %s2017_s4 = inlined_call_operand.hbm [shape: f32[4,256], index: 4, kind: output, shape index: {1}]  }
   0x1   :  { %12 = vsyncpa [#allocation4 + $0x1], 0 }
   0x2   :  { %13 = vsyncpa [#allocation5], 0 }
   0x3   :  { %15 = vsyncpa [#allocation5 + $0x1], 0 }
   0x4   :  { %16 = vsyncpa [#allocation8], 0 }
   0x5   :  { %18 = vsyncpa [#allocation8 + $0x1], 0  ;;  %s1465_s15 = smov 0   ;;  %s1467_s16 = smov 0  }
   0x6   :  { %s1469_s17 = smov 0   ;;  %s1471_s18 = smov 0  }
   0x7   :  { %s1473_s19 = smov 0   ;;  %s1475_s20 = smov 0  }
   0x8   :  { %s1477_s21 = smov 0   ;;  %s1479_s22 = smov 0  }
   0x9   :  { %s1481_s23 = smov 0   ;;  %s1483_s24 = smov 0  }
   0xa   :  { %s1485_s25 = smov 0  }
   0xb LB: > { %2022 = sst [smem:[#allocation15_spill]] %s1396_s17  ;;  %s1130_s26 = sadd.s32 4294967295, %s1428_s25   ;;  %s1428_s25 = sphi %s1485_s25, %s24_s25   ;;  %s1424_s24 = sphi %s1483_s24, %s2037_s24   ;;  %s1420_s23 = sphi %s1481_s23, %s2044_s23   ;;  %s1416_s22 = sphi %s1479_s22, %s2035_s22   ;;  %s1412_s21 = sphi %s1477_s21, %s2043_s21   ;;  %s1408_s20 = sphi %s1475_s20, %s2042_s20   ;;  %s1404_s19 = sphi %s1473_s19, %s2041_s19   ;;  %s1400_s18 = sphi %s1471_s18, %s2040_s18   ;;  %s1396_s17 = sphi %s1469_s17, %s2033_s17   ;;  %s1392_s16 = sphi %s1467_s16, %s2039_s16   ;;  %s1388_s15 = sphi %s1465_s15, %s2038_s15  }
   0xc   : > { %2023 = sst [smem:[#allocation16_spill]] %s1424_s24  ;;  %s1131_s27 = sadd.s32 4294967294, %s1428_s25  }
   0xd   : > { %s33_s28 = sadd.s32 1, %s1420_s23  ;;  %s36_s29 = sadd.s32 1, %s1424_s24 }
   0xe   : > { %p34_p0 = scmp.ge.s32.totalorder %s33_s28, 2  ;;  %s45_s30 = sadd.s32 1, %s1408_s20 }
   0xf   : > { %p52_p1 = scmp.ne.s32.totalorder %s1408_s20, %s1404_s19  ;;  %p53_p2 = scmp.eq.s32.totalorder %s1428_s25, 0 }
  0x10   : > { %s2046_s28 = smov (%p34_p0, %s33_s28), 0  ;;  %s2048_s29 = smov (!%p34_p0, %s36_s29), %s1424_s24 }
  0x11   : > { %2024 = sst [smem:[#allocation17_spill]] %s2046_s28  ;;  %s41_s5 = ssub.s32 %s1420_s23, %s2046_s28 }
  0x12   : > { %p1531_p3 = por %p53_p2, %p52_p1  ;;  %p38_p4 = scmp.ge.s32.totalorder %s2048_s29, 2 }
  0x13   : > { %p58_p5 = scmp.ne.s32.totalorder %s1404_s19, %s1400_s18  ;;  %p59_p6 = scmp.eq.s32.totalorder %s1130_s26, 0 }
  0x14   : > { %s123_s7 = sadd.s32 1, %s1396_s17  ;;  %s2050_s29 = smov (%p38_p4, %s2048_s29), 0 }
  0x15   : > { %2026 = sst [smem:[#allocation18_spill]] %s2050_s29  ;;  %p1539_p7 = por %p59_p6, %p58_p5 }
  0x16   : > { %p133_p8 = scmp.ne.s32.totalorder %s1396_s17, %s1392_s16  ;;  %s40_s9 = ssub.s32 %s1424_s24, %s2050_s29 }
  0x17   : > { %p134_p9 = scmp.eq.s32.totalorder %s1130_s26, 3  ;;  %s42_s10 = sor.u32 %s41_s5, %s40_s9 }
  0x18   : > { %p121_p10 = scmp.eq.s32.totalorder %s40_s9, 0  ;;  %p43_p11 = scmp.eq.s32.totalorder %s42_s10, 0 }
  0x19   : > { %p1547_p12 = por %p134_p9, %p133_p8  ;;  %p139_p13 = scmp.ne.s32.totalorder %s1392_s16, %s1388_s15 }
  0x1a   : > { %s1552_s12 = scalar_select %p121_p10, %s1396_s17, %s123_s7  }
  0x1b   : > { %s1555_s13 = scalar_select %p43_p11, %s1408_s20, %s45_s30  }
  0x1c   : > { %2029 = sst [smem:[#allocation19_spill]] %s1552_s12  ;;  %p140_p0 = scmp.eq.s32.totalorder %s1131_s27, 3 }
  0x1d   : > { %2030 = sst [smem:[#allocation20_spill]] %s1555_s13  ;;  %p1133_p2 = scmp.ge.s32.totalorder %s1428_s25, 4 }
  0x1e   : > { %p1559_p1 = por %p140_p0, %p139_p13 }
  0x1f   : > { %182 = sbr.rel (%p1133_p2) target bundleno = 53 (0x35), region = 16 }
  0x26   : > { %s186_s18 = sand.u32 1, %s1408_s20   ;;  %s1154_s26 = sshll.u32 %s1424_s24, 5 }
  0x27   : > { %s1134_s30 = sshll.u32 %s186_s18, 9  ;;  %s196_s5 = sadd.s32 %s1420_s23, %s1154_s26 }
  0x28   : > { %s1137_s27 = sshll.u32 %s196_s5, 7  ;;  %s190_s7 = scalar_lea.vmem [#allocation3], %s1134_s30 }
  0x29   : > { %s211_s9 = sshll.u32 %s190_s7, 4  ;;  %s198_s28 = scalar_lea.hbm %s2013_s0, %s1137_s27  ;;  %s212_s9 = int_to_ptr.vmem [resolvable:$true] %s211_s9 }
  0x2a   : > { %s1155_s13 = scalar_select %p1531_p3, [#allocation0], [#allocation11] }
  0x2b   : > { %s1430_s17 = smov 8192   ;;  %s1431_s24 = smov 2048  }
  0x2c   : > { %s203_s12 = sld [smem:[%s1155_s13]]   ;;  %s1432_s26 = smov 16  }
  0x2d   : > { %1156 = sst [smem:[#allocation10]] (%p1531_p3), %s1430_s17  ;;  %s1433_s30 = smov 256  }
  0x2e   : > { %1157 = sst [smem:[#allocation10 + $0x1]] (%p1531_p3), %s1431_s24  ;;  %s1434_s29 = smov 128  }
  0x2f   : > { %1158 = sst [smem:[#allocation10 + $0x2]] (%p1531_p3), %s1432_s26  ;;  %s1435_s5 = smov 8  }
  0x30   : > { %1159 = sst [smem:[#allocation10 + $0x3]] (%p1531_p3), %s1433_s30  ;;  %s187_s7 = scalar_lea.sflag [#allocation4], %s186_s18 }
  0x31   : > { %1160 = sst [smem:[#allocation10 + $0x4]] (%p1531_p3), %s1434_s29  ;;  %s1436_s10 = smov [#allocation9]  }
  0x32   : > { %1161 = sst [smem:[#allocation10 + $0x5]] (%p1531_p3), %s1435_s5  ;;  %s1138_s13 = sshll.u32 %s203_s12, 26 }
  0x33   : > { %s1139_s27 = sadd.s32 134217728, %s1138_s13 }
  0x34   : > { %1162 = dma.general (%p1531_p3), %s198_s28, 8192, %s212_s9, %s187_s7, %s1436_s10, [#allocation10], %s1139_s27, 0  }
  0x35 PF: > { %p1140_p4 = scmp.ge.s32.totalorder %s1428_s25, 1  ;;  %p244_p5 = scmp.lt.s32.totalorder %s1428_s25, 5 }
  0x37   : > { %p245_p6 = pnand %p1140_p4, %p244_p5 }
  0x38   : > { %s250_s17 = sand.u32 (!%p245_p6), 1, %s1404_s19  }
  0x39   : > { %248 = sbr.rel (%p245_p6) target bundleno = 464 (0x1d0), region = 32  ;;  %s1141_s24 = sshll.u32 (!%p245_p6), %s250_s17, 9 }
  0x3a   : > { %s251_s26 = scalar_lea.sflag (!%p245_p6), [#allocation4], %s250_s17  ;;  %s1589_s30 = scalar_lea.vmem (!%p245_p6), [#allocation3], %s1141_s24 }
  0x40   : > { %1375 = dma.done.wait (%p1539_p7), %s251_s26, 8192  }
  0x41   : > { %1377 = vsyncadd (%p1539_p7), %s251_s26, 4294959104  ;;  %s1596_s28 = sand.u32 1, %s1392_s16   ;;  %p291_p3 = scmp.lt.s32.totalorder %s1416_s22, 1 }
  0x42   : > { %s1142_s6 = sshll.u32 %s1596_s28, 2  ;;  %p1144_p7 = scmp.ne.s32.totalorder %s1412_s21, 0 }
  0x43   : > { %s1601_s12 = scalar_select %p291_p3, %s1416_s22, 1 }
  0x44   : > { %s1611_s27 = scalar_lea.vmem [#allocation6], %s1142_s6  ;;  %s1613_s7 = scalar_lea.vmem [#allocation7], %s1142_s6  ;;  %v1437_v0 = vmov (!%p1144_p7), -inf  }
  0x45   : > { %s293_s29 = scalar_lea.vmem %s2014_s1, %s1601_s12  ;;  %s296_s8 = scalar_lea.vmem %s2015_s2, %s1601_s12  ;;  %301 = vst [vmem:[#allocation2] sm:$0xf] (!%p1144_p7), %v1437_v0 }
  0x46   : > { %300 = sbr.rel (%p1144_p7) target bundleno = 77 (0x4d), region = 40 }
  0x4d PF: > { %v304_v1 = vld [vmem:[%s1589_s30 + $0x10] sm:$0xff]  ;;  %v302_v2 = vld [vmem:[%s1589_s30] sm:$0xff]  ;;  %v305_v3 = vld [vmem:[%s1589_s30 + $0x18] sm:$0xff]  ;;  %vm570_vm0 = vcmask 130112   ;;  %vm577_vm1 = vcmask 195712   ;;  %vm584_vm2 = vcmask 261312  }
  0x4e   : > { %370 = vmax.xlane.f32.xlu1 %v304_v1  ;;  %366 = vmax.xlane.f32.xlu0 %v302_v2  ;;  %v303_v4 = vld [vmem:[%s1589_s30 + $0x8] sm:$0xff]  ;;  %v306_v6 = vld [vmem:[%s1589_s30 + $0x20] sm:$0xff]  ;;  %v309_v7 = vld [vmem:[%s1589_s30 + $0x38] sm:$0xff]  ;;  %v559_v1 = vlaneseq  ;;  %vm591_vm3 = vcmask 326912   ;;  %vm598_vm4 = vcmask 392512   ;;  %vm605_vm5 = vcmask 458112  }
  0x4f   : > { %v307_v5 = vld [vmem:[%s1589_s30 + $0x28] sm:$0xff]  ;;  %v308_v8 = vld [vmem:[%s1589_s30 + $0x30] sm:$0xff]  ;;  %v310_v10 = vld [vmem:[%s1589_s30 + $0x40] sm:$0xff]  ;;  %vm612_vm6 = vcmask 523712   ;;  %vm619_vm7 = vcmask 589312   ;;  %vm626_vm8 = vcmask 654912  }
  0x50   : > { %v311_v9 = vld [vmem:[%s1589_s30 + $0x48] sm:$0xff]  ;;  %v313_v11 = vld [vmem:[%s1589_s30 + $0x58] sm:$0xff]  ;;  %v312_v12 = vld [vmem:[%s1589_s30 + $0x50] sm:$0xff]  ;;  %v1680_v2 = vand.u32 127, %v559_v1  ;;  %vm633_vm9 = vcmask 720512   ;;  %vm640_vm10 = vcmask 786112  }
  0x51   : > { %v315_v13 = vld [vmem:[%s1589_s30 + $0x68] sm:$0xff]  ;;  %v314_v14 = vld [vmem:[%s1589_s30 + $0x60] sm:$0xff]  ;;  %v317_v15 = vld [vmem:[%s1589_s30 + $0x78] sm:$0xff]  ;;  %vm647_vm11 = vcmask 851712   ;;  %vm654_vm12 = vcmask 917312   ;;  %vm661_vm13 = vcmask 982912  }
  0x52   : > { %372 = vmax.xlane.f32.xlu1 %v305_v3  ;;  %368 = vmax.xlane.f32.xlu0 %v303_v4  ;;  %v316_v16 = vld [vmem:[%s1589_s30 + $0x70] sm:$0xff]  ;;  %v319_v17 = vld [vmem:[%s1589_s30 + $0x88] sm:$0xff]  ;;  %v318_v18 = vld [vmem:[%s1589_s30 + $0x80] sm:$0xff]  ;;  %v1682_v3 = vshrl.u32 %v559_v1, 7  ;;  %v579_v4 = vadd.s32 4294967272, %v1680_v2  ;;  %v656_v1 = vadd.s32 4294967184, %v1680_v2 }
  0x53   : > { %v334_v19 = vld [vmem:[%s1589_s30 + $0x100] sm:$0xff]  ;;  %v320_v20 = vld [vmem:[%s1589_s30 + $0x90] sm:$0xff]  ;;  %v321_v21 = vld [vmem:[%s1589_s30 + $0x98] sm:$0xff]  ;;  %vm668_vm14 = vcmask 1048512   ;;  %vm907_vm15 = vcmask 1041409   ;;  %p1145_p8 = scmp.ne.s32.totalorder %s1412_s21, 1 }
  0x54   : > { %v335_v22 = vld [vmem:[%s1589_s30 + $0x108] sm:$0xff]  ;;  %v350_v23 = vld [vmem:[%s1589_s30 + $0x180] sm:$0xff]  ;;  %v336_v24 = vld [vmem:[%s1589_s30 + $0x110] sm:$0xff] }
  0x55   : > { %v322_v25 = vld [vmem:[%s1589_s30 + $0xa0] sm:$0xff]  ;;  %v351_v26 = vld [vmem:[%s1589_s30 + $0x188] sm:$0xff]  ;;  %v352_v27 = vld [vmem:[%s1589_s30 + $0x190] sm:$0xff] }
  0x56   : > { %376 = vmax.xlane.f32.xlu1 %v307_v5  ;;  %374 = vmax.xlane.f32.xlu0 %v306_v6  ;;  %v337_v28 = vld [vmem:[%s1589_s30 + $0x118] sm:$0xff]  ;;  %v338_v29 = vld [vmem:[%s1589_s30 + $0x120] sm:$0xff]  ;;  %v323_v30 = vld [vmem:[%s1589_s30 + $0xa8] sm:$0xff]  ;;  %v565_v5 = vadd.s32 4294967288, %v1680_v2  ;;  %v572_v6 = vadd.s32 4294967280, %v1680_v2 }
  0x57   : > { %v324_v31 = vld [vmem:[%s1589_s30 + $0xb0] sm:$0xff]  ;;  %v353_v32 = vld [vmem:[%s1589_s30 + $0x198] sm:$0xff]  ;;  %v354_v33 = vld [vmem:[%s1589_s30 + $0x1a0] sm:$0xff] }
  0x58   : > { %v339_v34 = vld [vmem:[%s1589_s30 + $0x128] sm:$0xff]  ;;  %v340_v35 = vld [vmem:[%s1589_s30 + $0x130] sm:$0xff]  ;;  %v325_v36 = vld [vmem:[%s1589_s30 + $0xb8] sm:$0xff] }
  0x59   : > { %v326_v37 = vld [vmem:[%s1589_s30 + $0xc0] sm:$0xff]  ;;  %v355_v38 = vld [vmem:[%s1589_s30 + $0x1a8] sm:$0xff]  ;;  %v356_v39 = vld [vmem:[%s1589_s30 + $0x1b0] sm:$0xff] }
  0x5a   : > { %380 = vmax.xlane.f32.xlu1 %v309_v7  ;;  %378 = vmax.xlane.f32.xlu0 %v308_v8  ;;  %v341_v40 = vld [vmem:[%s1589_s30 + $0x138] sm:$0xff]  ;;  %v342_v41 = vld [vmem:[%s1589_s30 + $0x140] sm:$0xff]  ;;  %v327_v42 = vld [vmem:[%s1589_s30 + $0xc8] sm:$0xff] }
  0x5b   : > { %v328_v43 = vld [vmem:[%s1589_s30 + $0xd0] sm:$0xff]  ;;  %v357_v44 = vld [vmem:[%s1589_s30 + $0x1b8] sm:$0xff]  ;;  %v358_v45 = vld [vmem:[%s1589_s30 + $0x1c0] sm:$0xff] }
  0x5c   : > { %v343_v46 = vld [vmem:[%s1589_s30 + $0x148] sm:$0xff]  ;;  %v344_v47 = vld [vmem:[%s1589_s30 + $0x150] sm:$0xff]  ;;  %v329_v48 = vld [vmem:[%s1589_s30 + $0xd8] sm:$0xff] }
  0x5d   : > { %v330_v49 = vld [vmem:[%s1589_s30 + $0xe0] sm:$0xff]  ;;  %v359_v50 = vld [vmem:[%s1589_s30 + $0x1c8] sm:$0xff]  ;;  %v360_v51 = vld [vmem:[%s1589_s30 + $0x1d0] sm:$0xff] }
  0x5e   : > { %384 = vmax.xlane.f32.xlu1 %v311_v9  ;;  %382 = vmax.xlane.f32.xlu0 %v310_v10  ;;  %v345_v52 = vld [vmem:[%s1589_s30 + $0x158] sm:$0xff]  ;;  %v346_v53 = vld [vmem:[%s1589_s30 + $0x160] sm:$0xff]  ;;  %v331_v54 = vld [vmem:[%s1589_s30 + $0xe8] sm:$0xff]  ;;  %v593_v9 = vadd.s32 4294967256, %v1680_v2  ;;  %v586_v10 = vadd.s32 4294967264, %v1680_v2 }
  0x5f   : > { %v332_v55 = vld [vmem:[%s1589_s30 + $0xf0] sm:$0xff]  ;;  %v361_v56 = vld [vmem:[%s1589_s30 + $0x1d8] sm:$0xff]  ;;  %v362_v57 = vld [vmem:[%s1589_s30 + $0x1e0] sm:$0xff] }
  0x60   : > { %v347_v58 = vld [vmem:[%s1589_s30 + $0x168] sm:$0xff]  ;;  %v348_v59 = vld [vmem:[%s1589_s30 + $0x170] sm:$0xff]  ;;  %v333_v60 = vld [vmem:[%s1589_s30 + $0xf8] sm:$0xff] }
  0x61   : > { %v349_v61 = vld [vmem:[%s1589_s30 + $0x178] sm:$0xff]  ;;  %v363_v62 = vld [vmem:[%s1589_s30 + $0x1e8] sm:$0xff]  ;;  %v364_v63 = vld [vmem:[%s1589_s30 + $0x1f0] sm:$0xff] }
  0x62   : > { %388 = vmax.xlane.f32.xlu1 %v313_v11  ;;  %386 = vmax.xlane.f32.xlu0 %v312_v12  ;;  %v365_v0 = vld [vmem:[%s1589_s30 + $0x1f8] sm:$0xff]  ;;  %v1691_v11 = vsub.s32 %v1680_v2, %v1682_v3  ;;  %v1694_v12 = vsub.s32 %v579_v4, %v1682_v3 }
  0x66   : > { %392 = vmax.xlane.f32.xlu1 %v315_v13  ;;  %390 = vmax.xlane.f32.xlu0 %v314_v14  ;;  %v1697_v13 = vsub.s32 %v565_v5, %v1682_v3  ;;  %v1700_v14 = vsub.s32 %v572_v6, %v1682_v3 }
  0x6a   : > { %396 = vmax.xlane.f32.xlu1 %v317_v15  ;;  %394 = vmax.xlane.f32.xlu0 %v316_v16 }
  0x6e   : > { %400 = vmax.xlane.f32.xlu1 %v319_v17  ;;  %398 = vmax.xlane.f32.xlu0 %v318_v18  ;;  %v1703_v17 = vsub.s32 %v593_v9, %v1682_v3  ;;  %v1706_v18 = vsub.s32 %v586_v10, %v1682_v3 }
  0x72   : > { %430 = vmax.xlane.f32.xlu1 %v334_v19  ;;  %402 = vmax.xlane.f32.xlu0 %v320_v20  ;;  %v600_v19 = vadd.s32 4294967248, %v1680_v2 }
  0x76   : > { %404 = vmax.xlane.f32.xlu1 %v321_v21  ;;  %432 = vmax.xlane.f32.xlu0 %v335_v22 }
  0x7a   : > { %462 = vmax.xlane.f32.xlu1 %v350_v23  ;;  %434 = vmax.xlane.f32.xlu0 %v336_v24  ;;  %v607_v23 = vadd.s32 4294967240, %v1680_v2 }
  0x7e   : > { %406 = vmax.xlane.f32.xlu1 %v322_v25  ;;  %464 = vmax.xlane.f32.xlu0 %v351_v26 }
  0x82   : > { %466 = vmax.xlane.f32.xlu1 %v352_v27  ;;  %436 = vmax.xlane.f32.xlu0 %v337_v28 }
  0x86   : > { %438 = vmax.xlane.f32.xlu1 %v338_v29  ;;  %408 = vmax.xlane.f32.xlu0 %v323_v30  ;;  %v1717_v29 = vsub.s32 %v600_v19, %v1682_v3  ;;  %v621_v30 = vadd.s32 4294967224, %v1680_v2 }
  0x8a   : > { %410 = vmax.xlane.f32.xlu1 %v324_v31  ;;  %468 = vmax.xlane.f32.xlu0 %v353_v32  ;;  %v614_v31 = vadd.s32 4294967232, %v1680_v2 }
  0x8e   : > { %470 = vmax.xlane.f32.xlu1 %v354_v33  ;;  %440 = vmax.xlane.f32.xlu0 %v339_v34 }
  0x92   : > { %442 = vmax.xlane.f32.xlu1 %v340_v35  ;;  %412 = vmax.xlane.f32.xlu0 %v325_v36  ;;  %v1725_v35 = vsub.s32 %v607_v23, %v1682_v3 }
  0x96   : > { %414 = vmax.xlane.f32.xlu1 %v326_v37  ;;  %472 = vmax.xlane.f32.xlu0 %v355_v38 }
  0x9a   : > { %474 = vmax.xlane.f32.xlu1 %v356_v39  ;;  %444 = vmax.xlane.f32.xlu0 %v341_v40  ;;  %v1730_v40 = vsub.s32 %v621_v30, %v1682_v3 }
  0x9e   : > { %446 = vmax.xlane.f32.xlu1 %v342_v41  ;;  %416 = vmax.xlane.f32.xlu0 %v327_v42  ;;  %v1733_v41 = vsub.s32 %v614_v31, %v1682_v3 }
  0xa2   : > { %418 = vmax.xlane.f32.xlu1 %v328_v43  ;;  %476 = vmax.xlane.f32.xlu0 %v357_v44  ;;  %v635_v44 = vadd.s32 4294967208, %v1680_v2 }
  0xa6   : > { %478 = vmax.xlane.f32.xlu1 %v358_v45  ;;  %448 = vmax.xlane.f32.xlu0 %v343_v46  ;;  %v628_v45 = vadd.s32 4294967216, %v1680_v2 }
  0xaa   : > { %450 = vmax.xlane.f32.xlu1 %v344_v47  ;;  %420 = vmax.xlane.f32.xlu0 %v329_v48 }
  0xae   : > { %422 = vmax.xlane.f32.xlu1 %v330_v49  ;;  %480 = vmax.xlane.f32.xlu0 %v359_v50  ;;  %v649_v50 = vadd.s32 4294967192, %v1680_v2 }
  0xb2   : > { %482 = vmax.xlane.f32.xlu1 %v360_v51  ;;  %452 = vmax.xlane.f32.xlu0 %v345_v52  ;;  %v642_v51 = vadd.s32 4294967200, %v1680_v2 }
  0xb6   : > { %454 = vmax.xlane.f32.xlu1 %v346_v53  ;;  %424 = vmax.xlane.f32.xlu0 %v331_v54  ;;  %v1746_v54 = vsub.s32 %v635_v44, %v1682_v3 }
  0xba   : > { %426 = vmax.xlane.f32.xlu1 %v332_v55  ;;  %484 = vmax.xlane.f32.xlu0 %v361_v56  ;;  %v1749_v55 = vsub.s32 %v628_v45, %v1682_v3 }
  0xbe   : > { %486 = vmax.xlane.f32.xlu1 %v362_v57  ;;  %456 = vmax.xlane.f32.xlu0 %v347_v58 }
  0xc2   : > { %458 = vmax.xlane.f32.xlu1 %v348_v59  ;;  %428 = vmax.xlane.f32.xlu0 %v333_v60  ;;  %v1754_v60 = vsub.s32 %v649_v50, %v1682_v3 }
  0xc6   : > { %460 = vmax.xlane.f32.xlu1 %v349_v61  ;;  %488 = vmax.xlane.f32.xlu0 %v363_v62  ;;  %v1757_v61 = vsub.s32 %v642_v51, %v1682_v3 }
  0xca   : > { %490 = vmax.xlane.f32.xlu0 %v364_v63  ;;  %492 = vmax.xlane.f32.xlu1 %v365_v0  ;;  %v663_v0 = vadd.s32 4294967176, %v1680_v2 }
  0xcc   : > { %v1768_v10 = vsub.s32 %v663_v0, %v1682_v3 }
  0xdb   : > { %v371_v7 = vpop.xlane.xlu1 %370  ;;  %v367_v8 = vpop.xlane.xlu0 %366 }
  0xdc   : > { %v564_v20 = vrot.slane %v367_v8, %v1691_v11  ;;  %v576_v24 = vrot.slane %v371_v7, %v1700_v14 }
  0xdf   : > { %v373_v15 = vpop.xlane.xlu1 %372  ;;  %v369_v16 = vpop.xlane.xlu0 %368 }
  0xe0   : > { %v583_v21 = vrot.slane %v373_v15, %v1694_v12  ;;  %v569_v22 = vrot.slane %v369_v16, %v1697_v13  ;;  %v1771_v15 = vsub.s32 %v656_v1, %v1682_v3 }
  0xe2   : > { %v571_v25 = vsel %vm570_vm0, %v569_v22, %v564_v20 }
  0xe3   : > { %v578_v26 = vsel %vm577_vm1, %v576_v24, %v571_v25  ;;  %v377_v27 = vpop.xlane.xlu1 %376  ;;  %v375_v28 = vpop.xlane.xlu0 %374 }
  0xe4   : > { %v597_v32 = vrot.slane %v377_v27, %v1703_v17  ;;  %v585_v33 = vsel %vm584_vm2, %v583_v21, %v578_v26  ;;  %v590_v34 = vrot.slane %v375_v28, %v1706_v18 }
  0xe6   : > { %v592_v36 = vsel %vm591_vm3, %v590_v34, %v585_v33 }
  0xe7   : > { %v381_v37 = vpop.xlane.xlu1 %380  ;;  %v599_v38 = vsel %vm598_vm4, %v597_v32, %v592_v36  ;;  %v379_v39 = vpop.xlane.xlu0 %378 }
  0xe8   : > { %v611_v42 = vrot.slane %v381_v37, %v1725_v35  ;;  %v604_v43 = vrot.slane %v379_v39, %v1717_v29 }
  0xea   : > { %v606_v46 = vsel %vm605_vm5, %v604_v43, %v599_v38 }
  0xeb   : > { %v385_v47 = vpop.xlane.xlu1 %384  ;;  %v613_v48 = vsel %vm612_vm6, %v611_v42, %v606_v46  ;;  %v383_v49 = vpop.xlane.xlu0 %382 }
  0xec   : > { %v625_v52 = vrot.slane %v385_v47, %v1730_v40  ;;  %v618_v53 = vrot.slane %v383_v49, %v1733_v41 }
  0xee   : > { %v620_v56 = vsel %vm619_vm7, %v618_v53, %v613_v48 }
  0xef   : > { %v389_v57 = vpop.xlane.xlu1 %388  ;;  %v627_v58 = vsel %vm626_vm8, %v625_v52, %v620_v56  ;;  %v387_v59 = vpop.xlane.xlu0 %386 }
  0xf0   : > { %v639_v62 = vrot.slane %v389_v57, %v1746_v54  ;;  %v632_v63 = vrot.slane %v387_v59, %v1749_v55 }
  0xf2   : > { %v634_v4 = vsel %vm633_vm9, %v632_v63, %v627_v58 }
  0xf3   : > { %v393_v5 = vpop.xlane.xlu1 %392  ;;  %v641_v6 = vsel %vm640_vm10, %v639_v62, %v634_v4  ;;  %v391_v7 = vpop.xlane.xlu0 %390 }
  0xf4   : > { %v653_v8 = vrot.slane %v393_v5, %v1754_v60  ;;  %v646_v9 = vrot.slane %v391_v7, %v1757_v61 }
  0xf6   : > { %v648_v2 = vsel %vm647_vm11, %v646_v9, %v641_v6 }
  0xf7   : > { %v397_v16 = vpop.xlane.xlu1 %396  ;;  %v655_v19 = vsel %vm654_vm12, %v653_v8, %v648_v2  ;;  %v395_v20 = vpop.xlane.xlu0 %394 }
  0xf8   : > { %v667_v21 = vrot.slane %v397_v16, %v1768_v10  ;;  %v660_v22 = vrot.slane %v395_v20, %v1771_v15 }
  0xfa   : > { %v662_v23 = vsel %vm661_vm13, %v660_v22, %v655_v19 }
  0xfb   : > { %v1779_v24 = vsel %vm668_vm14, %v667_v21, %v662_v23  ;;  %v401_v25 = vpop.xlane.xlu1 %400  ;;  %v399_v3 = vpop.xlane.xlu0 %398 }
  0xfc   : > { %v677_v26 = vrot.slane %v401_v25, %v1697_v13  ;;  %v673_v27 = vrot.slane %v399_v3, %v1691_v11 }
  0xfe   : > { %v678_v28 = vsel %vm570_vm0, %v677_v26, %v673_v27 }
  0xff   : > { %v431_v30 = vpop.xlane.xlu1 %430  ;;  %v403_v31 = vpop.xlane.xlu0 %402 }
 0x100   : > { %v682_v32 = vrot.slane %v403_v31, %v1700_v14  ;;  %v752_v37 = vrot.slane %v431_v30, %v1691_v11 }
 0x102   : > { %v683_v33 = vsel %vm577_vm1, %v682_v32, %v678_v28 }
 0x103   : > { %v405_v34 = vpop.xlane.xlu1 %404  ;;  %v433_v36 = vpop.xlane.xlu0 %432 }
 0x104   : > { %v687_v38 = vrot.slane %v405_v34, %v1694_v12  ;;  %v756_v39 = vrot.slane %v433_v36, %v1697_v13 }
 0x106   : > { %v688_v42 = vsel %vm584_vm2, %v687_v38, %v683_v33  ;;  %v757_v43 = vsel %vm570_vm0, %v756_v39, %v752_v37 }
 0x107   : > { %v463_v44 = vpop.xlane.xlu1 %462  ;;  %v435_v45 = vpop.xlane.xlu0 %434 }
 0x108   : > { %v761_v46 = vrot.slane %v435_v45, %v1700_v14  ;;  %v831_v28 = vrot.slane %v463_v44, %v1691_v11 }
 0x10a   : > { %v762_v47 = vsel %vm577_vm1, %v761_v46, %v757_v43 }
 0x10b   : > { %v407_v48 = vpop.xlane.xlu1 %406  ;;  %v465_v49 = vpop.xlane.xlu0 %464 }
 0x10c   : > { %v835_v3 = vrot.slane %v465_v49, %v1697_v13  ;;  %v692_v26 = vrot.slane %v407_v48, %v1706_v18 }
 0x10e   : > { %v836_v36 = vsel %vm570_vm0, %v835_v3, %v831_v28  ;;  %v693_v38 = vsel %vm591_vm3, %v692_v26, %v688_v42  ;;  %vm909_vm0 = vcmask 1042434  }
 0x10f   : > { %v467_v50 = vpop.xlane.xlu1 %466  ;;  %v437_v51 = vpop.xlane.xlu0 %436 }
 0x110   : > { %v840_v27 = vrot.slane %v467_v50, %v1700_v14  ;;  %v766_v30 = vrot.slane %v437_v51, %v1694_v12 }
 0x112   : > { %v841_v14 = vsel %vm577_vm1, %v840_v27, %v836_v36  ;;  %v767_v43 = vsel %vm584_vm2, %v766_v30, %v762_v47  ;;  %vm911_vm1 = vcmask 1043459  }
 0x113   : > { %v439_v52 = vpop.xlane.xlu1 %438  ;;  %v409_v53 = vpop.xlane.xlu0 %408 }
 0x114   : > { %v771_v33 = vrot.slane %v439_v52, %v1706_v18  ;;  %v697_v34 = vrot.slane %v409_v53, %v1703_v17 }
 0x116   : > { %v698_v42 = vsel %vm598_vm4, %v697_v34, %v693_v38 }
 0x117   : > { %v411_v56 = vpop.xlane.xlu1 %410  ;;  %v469_v57 = vpop.xlane.xlu0 %468 }
 0x118   : > { %v702_v37 = vrot.slane %v411_v56, %v1717_v29  ;;  %v845_v13 = vrot.slane %v469_v57, %v1694_v12  ;;  %v772_v12 = vsel %vm591_vm3, %v771_v33, %v767_v43 }
 0x11a   : > { %v703_v47 = vsel %vm605_vm5, %v702_v37, %v698_v42 }
 0x11b   : > { %v471_v58 = vpop.xlane.xlu1 %470  ;;  %v441_v59 = vpop.xlane.xlu0 %440 }
 0x11c   : > { %v776_v11 = vrot.slane %v441_v59, %v1703_v17  ;;  %v850_v44 = vrot.slane %v471_v58, %v1706_v18  ;;  %v846_v18 = vsel %vm584_vm2, %v845_v13, %v841_v14  ;;  %vm922_vm2 = vcmask (!%p1145_p8), 1043456  }
 0x11e   : > { %v777_v56 = vsel %vm598_vm4, %v776_v11, %v772_v12  ;;  %v851_v59 = vsel %vm591_vm3, %v850_v44, %v846_v18 }
 0x11f   : > { %v443_v62 = vpop.xlane.xlu1 %442  ;;  %v413_v63 = vpop.xlane.xlu0 %412 }
 0x120   : > { %v707_v39 = vrot.slane %v413_v63, %v1725_v35  ;;  %v781_v45 = vrot.slane %v443_v62, %v1717_v29 }
 0x122   : > { %v708_v57 = vsel %vm612_vm6, %v707_v39, %v703_v47  ;;  %v782_v62 = vsel %vm605_vm5, %v781_v45, %v777_v56 }
 0x123   : > { %v415_v0 = vpop.xlane.xlu1 %414  ;;  %v473_v1 = vpop.xlane.xlu0 %472 }
 0x124   : > { %v712_v46 = vrot.slane %v415_v0, %v1733_v41  ;;  %v855_v50 = vrot.slane %v473_v1, %v1703_v17 }
 0x126   : > { %v713_v63 = vsel %vm619_vm7, %v712_v46, %v708_v57 }
 0x127   : > { %v1793_v4 = vpop.xlane.xlu1 %474  ;;  %v445_v5 = vpop.xlane.xlu0 %444 }
 0x128   : > { %v786_v52 = vrot.slane %v445_v5, %v1725_v35  ;;  %v860_v28 = vrot.slane %v1793_v4, %v1717_v29 }
 0x12b   : > { %v1795_v6 = vpop.xlane.xlu1 %446  ;;  %v417_v7 = vpop.xlane.xlu0 %416 }
 0x12c   : > { %v717_v51 = vrot.slane %v417_v7, %v1730_v40  ;;  %v791_v58 = vrot.slane %v1795_v6, %v1733_v41  ;;  %v856_v7 = vsel %vm598_vm4, %v855_v50, %v851_v59 }
 0x12f   : > { %v419_v8 = vpop.xlane.xlu1 %418  ;;  %v1797_v9 = vpop.xlane.xlu0 %476 }
 0x130   : > { %v722_v53 = vrot.slane %v419_v8, %v1749_v55  ;;  %v718_v8 = vsel %vm626_vm8, %v717_v51, %v713_v63 }
 0x132   : > { %v723_v26 = vsel %vm633_vm9, %v722_v53, %v718_v8 }
 0x133   : > { %v1799_v2 = vpop.xlane.xlu1 %478  ;;  %v1801_v16 = vpop.xlane.xlu0 %448 }
 0x134   : > { %v796_v3 = vrot.slane %v1801_v16, %v1730_v40  ;;  %v870_v34 = vrot.slane %v1799_v2, %v1733_v41 }
 0x137   : > { %v1803_v19 = vpop.xlane.xlu1 %450  ;;  %v421_v20 = vpop.xlane.xlu0 %420 }
 0x138   : > { %v727_v17 = vrot.slane %v421_v20, %v1746_v54  ;;  %v787_v20 = vsel %vm612_vm6, %v786_v52, %v782_v62  ;;  %v801_v27 = vrot.slane %v1803_v19, %v1749_v55 }
 0x139   : > { %v792_v30 = vsel %vm619_vm7, %v791_v58, %v787_v20  ;;  %v494_v58 = vld [vmem:[#allocation2] sm:$0xf] }
 0x13a   : > { %v728_v33 = vsel %vm640_vm10, %v727_v17, %v723_v26  ;;  %v797_v4 = vsel %vm626_vm8, %v796_v3, %v792_v30 }
 0x13b   : > { %v423_v21 = vpop.xlane.xlu1 %422  ;;  %v1805_v22 = vpop.xlane.xlu0 %480 }
 0x13c   : > { %v732_v0 = vrot.slane %v423_v21, %v1757_v61  ;;  %v875_v41 = vrot.slane %v1805_v22, %v1730_v40 }
 0x13e   : > { %v733_v19 = vsel %vm647_vm11, %v732_v0, %v728_v33 }
 0x13f   : > { %v1807_v23 = vpop.xlane.xlu1 %482  ;;  %v1809_v25 = vpop.xlane.xlu0 %452 }
 0x140   : > { %v806_v16 = vrot.slane %v1809_v25, %v1746_v54  ;;  %v880_v14 = vrot.slane %v1807_v23, %v1749_v55 }
 0x143   : > { %v1816_v31 = vpop.xlane.xlu1 %454  ;;  %v425_v32 = vpop.xlane.xlu0 %424 }
 0x144   : > { %v737_v6 = vrot.slane %v425_v32, %v1754_v60  ;;  %v865_v32 = vrot.slane %v1797_v9, %v1725_v35  ;;  %v811_v36 = vrot.slane %v1816_v31, %v1757_v61  ;;  %v802_v35 = vsel %vm633_vm9, %v801_v27, %v797_v4 }
 0x145   : > { %v861_v31 = vsel %vm605_vm5, %v860_v28, %v856_v7  ;;  %v807_v11 = vsel %vm640_vm10, %v806_v16, %v802_v35 }
 0x146   : > { %v738_v13 = vsel %vm654_vm12, %v737_v6, %v733_v19  ;;  %v866_v43 = vsel %vm612_vm6, %v865_v32, %v861_v31  ;;  %v812_v44 = vsel %vm647_vm11, %v811_v36, %v807_v11  ;;  %v1146_v36 = vld [vmem:[%s293_s29] ss:$0 sm:$0xff] (!%p1145_p8) }
 0x147   : > { %v427_v48 = vpop.xlane.xlu1 %426  ;;  %v1831_v49 = vpop.xlane.xlu0 %484 }
 0x148   : > { %v742_v21 = vrot.slane %v427_v48, %v1771_v15  ;;  %v885_v40 = vrot.slane %v1831_v49, %v1746_v54  ;;  %v871_v48 = vsel %vm619_vm7, %v870_v34, %v866_v43 }
 0x149   : > { %v876_v42 = vsel %vm626_vm8, %v875_v41, %v871_v48 }
 0x14a   : > { %v743_v9 = vsel %vm661_vm13, %v742_v21, %v738_v13  ;;  %v881_v54 = vsel %vm633_vm9, %v880_v14, %v876_v42 }
 0x14b   : > { %v487_v1 = vpop.xlane.xlu1 %486  ;;  %v457_v5 = vpop.xlane.xlu0 %456  ;;  %v886_v49 = vsel %vm640_vm10, %v885_v40, %v881_v54 }
 0x14c   : > { %v816_v38 = vrot.slane %v457_v5, %v1754_v60  ;;  %v890_v55 = vrot.slane %v487_v1, %v1757_v61 }
 0x14e   : > { %v817_v23 = vsel %vm654_vm12, %v816_v38, %v812_v44  ;;  %v891_v52 = vsel %vm647_vm11, %v890_v55, %v886_v49 }
 0x14f   : > { %v459_v37 = vpop.xlane.xlu1 %458  ;;  %v429_v29 = vpop.xlane.xlu0 %428 }
 0x150   : > { %v747_v25 = vrot.slane %v429_v29, %v1768_v10  ;;  %v821_v2 = vrot.slane %v459_v37, %v1771_v15  ;;  %v1147_v29 = vld [vmem:[%s296_s8] ss:$0 sm:$0xff] (!%p1145_p8) }
 0x152   : > { %v748_v39 = vsel %vm668_vm14, %v747_v25, %v743_v9  ;;  %v822_v50 = vsel %vm661_vm13, %v821_v2, %v817_v23 }
 0x153   : > { %v908_v22 = vsel %vm907_vm15, %v748_v39, %v1779_v24  ;;  %v461_v45 = vpop.xlane.xlu1 %460  ;;  %v489_v46 = vpop.xlane.xlu0 %488 }
 0x154   : > { %v826_v12 = vrot.slane %v461_v45, %v1768_v10  ;;  %v895_v51 = vrot.slane %v489_v46, %v1754_v60 }
 0x156   : > { %v827_v24 = vsel %vm668_vm14, %v826_v12, %v822_v50  ;;  %v896_v57 = vsel %vm654_vm12, %v895_v51, %v891_v52 }
 0x157   : > { %v910_v47 = vsel %vm909_vm0, %v827_v24, %v908_v22  ;;  %v491_v18 = vpop.xlane.xlu0 %490  ;;  %v493_v61 = vpop.xlane.xlu1 %492 }
 0x158   : > { %v900_v53 = vrot.slane %v491_v18, %v1771_v15  ;;  %v905_v56 = vrot.slane %v493_v61, %v1768_v10 }
 0x159   : > { %919 = sbr.rel (%p1145_p8) target bundleno = 416 (0x1a0), region = 44 }
 0x15a   : > { %v901_v60 = vsel %vm661_vm13, %v900_v53, %v896_v57 }
 0x15b   : > { %v906_v17 = vsel %vm668_vm14, %v905_v56, %v901_v60 }
 0x15c   : > { %v912_v59 = vsel %vm911_vm1, %v906_v17, %v910_v47 }
 0x15d   : > { %v914_v62 = vmax.f32 %v494_v58, %v912_v59 }
 0x15f   : > { %915 = vst [vmem:[#allocation2] sm:$0xf] %v914_v62 }
 0x166   : > { %v920_v63 = vld [vmem:[#allocation2] sm:$0xf] }
 0x167   : > { %921 = vst [vmem:[%s1611_s27] sm:$0xf] %v920_v63  ;;  %v923_v15 = vsel %vm922_vm2, %v920_v63, 0.0 }
 0x168   : > { %v924_v10 = vrot.slane %v923_v15, 4 }
 0x16a   : > { %v925_v0 = vadd.f32 %v924_v10, %v923_v15 }
 0x16c   : > { %v926_v1 = vrot.slane %v925_v0, 2 }
 0x16e   : > { %v927_v5 = vadd.f32 %v926_v1, %v925_v0 }
 0x170   : > { %v928_v7 = vrot.slane %v927_v5, 1 }
 0x172   : > { %v929_v8 = vadd.f32 %v928_v7, %v927_v5 }
 0x174   : > { %v931_v3 = vmul.f32 0.25, %v929_v8 }
 0x176   : > { %v932_v6 = vsub.f32 %v920_v63, %v931_v3 }
 0x178   : > { %v933_v20 = vmul.f32 %v932_v6, %v932_v6 }
 0x17a   : > { %v934_v26 = vsel %vm922_vm2, %v933_v20, 0.0 }
 0x17b   : > { %v935_v27 = vrot.slane %v934_v26, 4 }
 0x17d   : > { %v936_v21 = vadd.f32 %v935_v27, %v934_v26 }
 0x17f   : > { %v937_v28 = vrot.slane %v936_v21, 2 }
 0x181   : > { %v938_v30 = vadd.f32 %v937_v28, %v936_v21 }
 0x183   : > { %v939_v33 = vrot.slane %v938_v30, 1 }
 0x185   : > { %v940_v16 = vadd.f32 %v939_v33, %v938_v30 }
 0x187   : > { %v941_v32 = vmul.f32 0.25, %v940_v16 }
 0x189   : > { %v942_v34 = vadd.f32 1e-05, %v941_v32 }
 0x18b   : > { %1272 = vrsqrt.f32 %v942_v34 }
 0x195   : > { %v1273_v19 = vpop.eup %1272 }
 0x196   : > { %v944_v37 = vmul.f32 %v1273_v19, %v932_v6 }
 0x198   : > { %v952_v4 = vmul.f32 %v1146_v36, %v944_v37 }
 0x19a   : > { %v960_v13 = vadd.f32 %v1147_v29, %v952_v4 }
 0x19c   : > { %vm961_vm3 = vcmp.ge.f32.partialorder %v960_v13, 0.0  ;;  %v962_v38 = vmul.f32 0.1, %v960_v13 }
 0x19e   : > { %v963_v25 = vsel %vm961_vm3, %v960_v13, %v962_v38 }
 0x19f   : > { %964 = vst [vmem:[%s1613_s7] sm:$0xf] %v963_v25 }
 0x1a0 PF: > { %s1150_s26 = sshll.u32 %s1416_s22, 6  ;;  %s984_s12 = sshll.u32 %s1611_s27, 4  ;;  %s985_s12 = int_to_ptr.vmem [resolvable:$true] %s984_s12 }
 0x1a1   : > { %s1929_s18 = scalar_lea.hbm %s2016_s3, %s1150_s26  ;;  %s966_s9 = scalar_lea.sflag [#allocation5], %s1596_s28 }
 0x1a2   : > { %s1274_s29 = scalar_lea.vmem %s985_s12, 64  ;;  %s1438_s5 = smov [#allocation6]  }
 0x1a3   : > { %p1275_p9 = scmp.ne.s32.totalorder %s985_s12, %s1274_s29  ;;  %s1278_s13 = sshll.u32 %s1438_s5, 4  ;;  %s1279_s13 = int_to_ptr.vmem [resolvable:$false] %s1278_s13 }
 0x1a4   : > { %s1280_s8 = scalar_lea.vmem %s1279_s13, 128  ;;  %p1281_p13 = scmp.lt.s32.totalorder %s985_s12, %s1279_s13 }
 0x1a5   : > { %p1276_p10 = pnand %p1275_p9, %p1547_p12  ;;  %p1282_p0 = scmp.lt.s32.totalorder %s1280_s8, %s1274_s29 }
 0x1a7   : > { %p1277_p11 = pneg %p1276_p10  ;;  %p1283_p2 = por %p1282_p0, %p1281_p13 }
 0x1a9   : > { %p1284_p4 = pnand %p1283_p2, %p1277_p11 }
 0x1ab   : > { %1287 = shalt.err (!%p1284_p4)
}
 0x1ac   : > { %s1288_s27 = scalar_lea.hbm %s1929_s18, 64  ;;  %s1292_s17 = scalar_lea.hbm %s2016_s3, 128 }
 0x1ad   : > { %p1289_p5 = scmp.ne.s32.totalorder %s1929_s18, %s1288_s27  ;;  %p1293_p7 = scmp.lt.u32.totalorder %s1929_s18, %s2016_s3 }
 0x1ae   : > { %p1294_p8 = scmp.lt.u32.totalorder %s1292_s17, %s1288_s27  ;;  %p1296_p10 = scmp.lt.u32.totalorder %s1288_s27, %s1929_s18 }
 0x1af   : > { %p1290_p6 = pnand %p1289_p5, %p1547_p12 }
 0x1b0   : > { %p1295_p9 = por %p1294_p8, %p1293_p7 }
 0x1b1   : > { %p1291_p3 = pneg %p1290_p6 }
 0x1b2   : > { %p1297_p11 = por %p1296_p10, %p1295_p9 }
 0x1b4   : > { %p1298_p13 = pnand %p1297_p11, %p1291_p3 }
 0x1b6   : > { %1301 = shalt.err (!%p1298_p13)
}
 0x1b7   : > { %1164 = dma.vmem_to_hbm [thread:$0]  (%p1547_p12), %s985_s12, 64, %s1929_s18, %s966_s9  }
 0x1b8   : > { %s1955_s5 = scalar_lea.hbm %s2017_s4, %s1150_s26  ;;  %s997_s13 = sshll.u32 %s1613_s7, 4  ;;  %s998_s13 = int_to_ptr.vmem [resolvable:$true] %s997_s13 }
 0x1b9   : > { %s971_s8 = scalar_lea.sflag [#allocation8], %s1596_s28  ;;  %s1302_s27 = scalar_lea.vmem %s998_s13, 64 }
 0x1ba   : > { %p1303_p0 = scmp.ne.s32.totalorder %s998_s13, %s1302_s27  ;;  %s1439_s21 = smov [#allocation7]  }
 0x1bb   : > { %s1306_s10 = sshll.u32 %s1439_s21, 4  ;;  %s1307_s10 = int_to_ptr.vmem [resolvable:$false] %s1306_s10 }
 0x1bc   : > { %p1304_p2 = pnand %p1303_p0, %p1547_p12  ;;  %s1308_s17 = scalar_lea.vmem %s1307_s10, 128 }
 0x1bd   : > { %p1309_p5 = scmp.lt.s32.totalorder %s998_s13, %s1307_s10  ;;  %p1310_p6 = scmp.lt.s32.totalorder %s1308_s17, %s1302_s27 }
 0x1be   : > { %p1305_p4 = pneg %p1304_p2 }
 0x1bf   : > { %p1311_p3 = por %p1310_p6, %p1309_p5 }
 0x1c1   : > { %p1312_p7 = pnand %p1311_p3, %p1305_p4 }
 0x1c3   : > { %1315 = shalt.err (!%p1312_p7)
}
 0x1c4   : > { %s1316_s22 = scalar_lea.hbm %s1955_s5, 64  ;;  %s1320_s26 = scalar_lea.hbm %s2017_s4, 128 }
 0x1c5   : > { %p1317_p8 = scmp.ne.s32.totalorder %s1955_s5, %s1316_s22  ;;  %p1321_p11 = scmp.lt.u32.totalorder %s1955_s5, %s2017_s4 }
 0x1c6   : > { %p1322_p13 = scmp.lt.u32.totalorder %s1320_s26, %s1316_s22  ;;  %p1324_p2 = scmp.lt.u32.totalorder %s1316_s22, %s1955_s5 }
 0x1c7   : > { %p1318_p9 = pnand %p1317_p8, %p1547_p12 }
 0x1c8   : > { %p1323_p0 = por %p1322_p13, %p1321_p11 }
 0x1c9   : > { %p1319_p10 = pneg %p1318_p9 }
 0x1ca   : > { %p1325_p4 = por %p1324_p2, %p1323_p0 }
 0x1cc   : > { %p1326_p5 = pnand %p1325_p4, %p1319_p10 }
 0x1ce   : > { %1329 = shalt.err (!%p1326_p5)
}
 0x1cf   : > { %1165 = dma.vmem_to_hbm [thread:$0]  (%p1547_p12), %s998_s13, 64, %s1955_s5, %s971_s8  }
 0x1d0 PF: > { %p1175_p6 = scmp.ge.s32.totalorder %s1428_s25, 2  ;;  %s1009_s9 = sand.u32 1, %s1388_s15  }
 0x1d1   : > { %s1010_s24 = scalar_lea.sflag [#allocation5], %s1009_s9 }
 0x1d2   : > { %p1169_p3 = pnand %p1175_p6, %p1559_p1 }
 0x1d4   : > { %1379 = dma.done.wait (!%p1169_p3), %s1010_s24, 64  }
 0x1d5   : > { %1381 = vsyncadd (!%p1169_p3), %s1010_s24, 4294967232  ;;  %s1019_s30 = scalar_lea.sflag [#allocation8], %s1009_s9 }
 0x1d6   : > { %1383 = dma.done.wait (!%p1169_p3), %s1019_s30, 64  }
 0x1d7   : > { %1385 = vsyncadd (!%p1169_p3), %s1019_s30, 4294967232  ;;  %s24_s25 = sadd.s32 1, %s1428_s25   ;;  %s2032_s11 = sld [smem:[#allocation15_spill]] }
 0x1d8   : > { %p21_p7 = scmp.ge.s32.totalorder %s24_s25, 6   ;;  %s2033_s17 = sld [smem:[#allocation19_spill]] }
 0x1d9   : > { %s2034_s6 = sld [smem:[#allocation20_spill]]  ;;  %s2035_s22 = sld [smem:[#allocation16_spill]] }
 0x1da   : > { %s2036_s29 = sld [smem:[#allocation17_spill]]  ;;  %s2037_s24 = sld [smem:[#allocation18_spill]] }
 0x1db   : > { %s2038_s15 = smov %s1392_s16  ;;  %s2040_s18 = smov %s1404_s19 }
 0x1dc   : > { %s2041_s19 = smov %s1408_s20  ;;  %s2043_s21 = smov %s1420_s23 }
 0x1dd   : > { %s2039_s16 = smov %s2032_s11  ;;  %23 = sbr.rel (!%p21_p7) target bundleno = 11 (0xb), region = 113 }
 0x1df   : > { %s2042_s20 = smov %s2034_s6 }
 0x1e0   : > { %s2044_s23 = smov %s2036_s29 }
 0x1e4   :  { %1024 = vsyncpa [#allocation4], 1 }
 0x1e5   :  { %1026 = vsyncpa [#allocation4 + $0x1], 1 }
 0x1e6   :  { %1027 = vsyncpa [#allocation5], 1 }
 0x1e7   :  { %1029 = vsyncpa [#allocation5 + $0x1], 1 }
 0x1e8   :  { %1030 = vsyncpa [#allocation8], 1 }
 0x1e9   :  { %1032 = vsyncpa [#allocation8 + $0x1], 1 }

</bundles_post_ra>
